<compile_context>
chip_gen: v5e
topology: v5e:2x2
jax: 0.10.0
libtpu: 0.0.40
codegen_flags: <defaults>
</compile_context>

<pallas_src>
import functools

import jax
import jax.numpy as jnp
from jax.experimental import pallas as pl
from jax.experimental.pallas import tpu as pltpu


def _distill_kl_kernel(ys_ref, yt_ref, out_ref, *, T, logit_stand, num_rows,
                       tile_rows, mask_rows):
    ys = ys_ref[...].astype(jnp.float32)
    yt = yt_ref[...].astype(jnp.float32)

    if logit_stand:
        # per-row standardization: (x - mean) / (1e-7 + std)  (torch std ddof=1)
        # per-row reciprocal multiply instead of a full-tile (TB, C) divide.
        def _normalize(x):
            mean = jnp.mean(x, axis=1, keepdims=True)
            var = jnp.sum((x - mean) ** 2, axis=1, keepdims=True) / (x.shape[1] - 1)
            inv_std = pl.reciprocal(1e-7 + jnp.sqrt(var), approx=False)  # (TB, 1)
            return (x - mean) * inv_std

        ys = _normalize(ys)
        yt = _normalize(yt)

    inv_T = 1.0 / T
    # max-shifted tempered logits (argmax is scale-invariant for T > 0)
    zs = (ys - jnp.max(ys, axis=1, keepdims=True)) * inv_T   # (TB, C)
    zt = (yt - jnp.max(yt, axis=1, keepdims=True)) * inv_T   # (TB, C)

    es = jnp.exp(zs)                                          # (TB, C)
    et = jnp.exp(zt)                                          # (TB, C)
    Zs = jnp.sum(es, axis=1, keepdims=True)                   # (TB, 1)
    st = jnp.sum(et, axis=1, keepdims=True)                   # (TB, 1)

    # row KL = (1/st) * sum_c et*(zt - zs) + log(Zs) - log(st)
    # (sum_c et/st == 1 folds the per-row log terms out of the full tile;
    #  et underflow to 0 contributes exactly 0, matching torch xlogy behavior)
    num = jnp.sum(et * (zt - zs), axis=1, keepdims=True)      # (TB, 1)
    row_kl = num * pl.reciprocal(st, approx=False) + (jnp.log(Zs) - jnp.log(st))

    if mask_rows:
        # Final tile is ragged: drop padded rows.  Any NaN/Inf they produced
        # stays confined to the unselected operand of the select.
        row_ids = pl.program_id(0) * tile_rows + jax.lax.broadcasted_iota(
            jnp.int32, row_kl.shape, 0)
        row_kl = jnp.where(row_ids < num_rows, row_kl, 0.0)

    partial = jnp.sum(row_kl, axis=0, keepdims=True)          # (1, 1)
    # dense (8, 128) store: all sublanes/lanes carry the same partial sum
    out_ref[0, :, :] = jnp.broadcast_to(partial, (8, 128))


def _pick_tile_rows(B, C, itemsize):
    # sublane packing: 8 rows for f32, 16 for bf16, 32 for int8/fp8
    row_align = max(8, 32 // itemsize)
    # Per-step VMEM footprint:
    #   DMA buffers : 2 inputs x 2 pipeline buffers x TB x C x itemsize
    #   kernel temps: ~6 live (TB, C) float32 arrays after the f32 cast
    # Keep the total ~<= 14 MiB (fits v5e's 16 MiB default scoped VMEM); the
    # pallas_call also raises vmem_limit_bytes explicitly for headroom.
    budget = 14 * 1024 * 1024
    bytes_per_row = 2 * 2 * C * itemsize + 6 * C * 4
    tb = (budget // max(bytes_per_row, 1)) // row_align * row_align
    tb = max(row_align, min(tb, 4096))
    # keep >= ~8 grid steps so the "parallel" batch axis load-balances both
    # v7x TensorCores (no-op for tiny B).
    tb = min(tb, max(row_align, pl.cdiv(pl.cdiv(B, 8), row_align) * row_align))
    return int(tb)


def distill_kl(y_s, y_t, *, T, logit_stand=False):
    """KL distillation loss; y_s, y_t: [B, C] logits. Returns scalar f32."""
    assert y_s.shape == y_t.shape and y_s.ndim == 2
    B, C = y_s.shape
    itemsize = jnp.dtype(y_s.dtype).itemsize
    tb = _pick_tile_rows(B, C, itemsize)
    num_tiles = int(pl.cdiv(B, tb))
    mask_rows = (B % tb) != 0

    kernel = functools.partial(
        _distill_kl_kernel, T=float(T), logit_stand=logit_stand,
        num_rows=B, tile_rows=tb, mask_rows=mask_rows)

    cost = pl.CostEstimate(
        flops=8 * B * C,
        transcendentals=2 * B * C,
        bytes_accessed=2 * B * C * itemsize + num_tiles * 8 * 128 * 4)

    partials = pl.pallas_call(
        kernel,
        out_shape=jax.ShapeDtypeStruct((num_tiles, 8, 128), jnp.float32),
        grid_spec=pltpu.PrefetchScalarGridSpec(
            num_scalar_prefetch=0,
            grid=(num_tiles,),
            in_specs=[
                pl.BlockSpec((tb, C), lambda i: (i, 0)),
                pl.BlockSpec((tb, C), lambda i: (i, 0)),
            ],
            out_specs=pl.BlockSpec((1, 8, 128), lambda i: (i, 0, 0)),
        ),
        compiler_params=pltpu.CompilerParams(
            dimension_semantics=("parallel",),
            vmem_limit_bytes=32 * 1024 * 1024,
        ),
        cost_estimate=cost,
    )(y_s, y_t)

    # tiny final reduction + scale in plain JAX (T**2 / B folded once)
    return jnp.sum(partials[:, 0, 0]) * (float(T) * float(T) / B)


def _reference(y_s, y_t, T, logit_stand=False):
    ys = y_s.astype(jnp.float32)
    yt = y_t.astype(jnp.float32)
    if logit_stand:
        def _norm(x):
            mean = jnp.mean(x, axis=1, keepdims=True)
            std = jnp.sqrt(
                jnp.sum((x - mean) ** 2, axis=1, keepdims=True) / (x.shape[1] - 1))
            return (x - mean) / (1e-7 + std)
        ys, yt = _norm(ys), _norm(yt)
    log_p_s = jax.nn.log_softmax(ys / T, axis=1)
    log_p_t = jax.nn.log_softmax(yt / T, axis=1)
    p_t = jnp.exp(log_p_t)
    kl = p_t * (log_p_t - log_p_s)
    return jnp.sum(kl) * (T ** 2) / y_s.shape[0]


if __name__ == "__main__":
    key = jax.random.PRNGKey(0)
    k1, k2, k3, k4, k5, k6 = jax.random.split(key, 6)

    # 1) basic f32
    B, C, T = 8, 128, 4.0
    y_s = jax.random.normal(k1, (B, C), dtype=jnp.float32) * 3.0
    y_t = jax.random.normal(k2, (B, C), dtype=jnp.float32) * 3.0
    loss = jax.block_until_ready(distill_kl(y_s, y_t, T=T))
    ref = _reference(y_s, y_t, T)
    assert jnp.allclose(loss, ref, rtol=1e-4, atol=1e-5), (loss, ref)

    # 2) ragged final tile + logit_stand (exercises the masking path)
    B2, C2, T2 = 12, 96, 2.0
    y_s2 = jax.random.normal(k3, (B2, C2), dtype=jnp.float32) * 3.0
    y_t2 = jax.random.normal(k4, (B2, C2), dtype=jnp.float32) * 3.0
    loss2 = jax.block_until_ready(distill_kl(y_s2, y_t2, T=T2, logit_stand=True))
    ref2 = _reference(y_s2, y_t2, T2, logit_stand=True)
    assert jnp.allclose(loss2, ref2, rtol=1e-4, atol=1e-5), (loss2, ref2)

    # 3) bf16 inputs stream as bf16 over HBM, f32 math in-kernel
    B3, C3, T3 = 32, 128, 4.0
    y_s3 = (jax.random.normal(k5, (B3, C3), dtype=jnp.float32) * 3.0).astype(jnp.bfloat16)
    y_t3 = (jax.random.normal(k6, (B3, C3), dtype=jnp.float32) * 3.0).astype(jnp.bfloat16)
    loss3 = jax.block_until_ready(distill_kl(y_s3, y_t3, T=T3))
    ref3 = _reference(y_s3, y_t3, T3)
    assert jnp.allclose(loss3, ref3, rtol=1e-4, atol=1e-5), (loss3, ref3)

    print("KERNEL_OK")
</pallas_src>

<mosaic_0001>
module attributes {stable_mosaic.version = 11 : i64} {
  func.func @_distill_kl_kernel(%arg0: i32, %arg1: memref<8x128xf32, #tpu.memory_space<vmem>>, %arg2: memref<8x128xf32, #tpu.memory_space<vmem>>, %arg3: memref<1x8x128xf32, #tpu.memory_space<vmem>>) attributes {dimension_semantics = [#tpu.dimension_semantics<parallel>], iteration_bounds = array<i64: 1>, scalar_prefetch = 0 : i64, scratch_operands = 0 : i64, tpu.core_type = #tpu.core_type<tc>, window_params = [{transform_indices = @transform_0, window_bounds = array<i64: 8, 128>}, {transform_indices = @transform_1, window_bounds = array<i64: 8, 128>}, {transform_indices = @transform_2, window_bounds = array<i64: 1, 8, 128>}]} {
    %c0 = arith.constant 0 : index
    %c0_0 = arith.constant 0 : index
    %0 = vector.load %arg1[%c0, %c0_0] : memref<8x128xf32, #tpu.memory_space<vmem>>, vector<8x128xf32>
    %c0_1 = arith.constant 0 : index
    %c0_2 = arith.constant 0 : index
    %1 = vector.load %arg2[%c0_1, %c0_2] : memref<8x128xf32, #tpu.memory_space<vmem>>, vector<8x128xf32>
    %cst = arith.constant dense<0xFF800000> : vector<8xf32>
    %2 = vector.multi_reduction <maximumf>, %0, %cst [1] : vector<8x128xf32> to vector<8xf32>
    %3 = vector.shape_cast %2 : vector<8xf32> to vector<8x1xf32>
    %4 = vector.broadcast %3 : vector<8x1xf32> to vector<8x128xf32>
    %5 = arith.subf %0, %4 : vector<8x128xf32>
    %cst_3 = arith.constant 2.500000e-01 : f32
    %6 = vector.broadcast %cst_3 : f32 to vector<8x128xf32>
    %7 = arith.mulf %5, %6 : vector<8x128xf32>
    %cst_4 = arith.constant dense<0xFF800000> : vector<8xf32>
    %8 = vector.multi_reduction <maximumf>, %1, %cst_4 [1] : vector<8x128xf32> to vector<8xf32>
    %9 = vector.shape_cast %8 : vector<8xf32> to vector<8x1xf32>
    %10 = vector.broadcast %9 : vector<8x1xf32> to vector<8x128xf32>
    %11 = arith.subf %1, %10 : vector<8x128xf32>
    %cst_5 = arith.constant 2.500000e-01 : f32
    %12 = vector.broadcast %cst_5 : f32 to vector<8x128xf32>
    %13 = arith.mulf %11, %12 : vector<8x128xf32>
    %14 = math.exp %7 : vector<8x128xf32>
    %15 = math.exp %13 : vector<8x128xf32>
    %cst_6 = arith.constant dense<0.000000e+00> : vector<8xf32>
    %16 = vector.multi_reduction <add>, %14, %cst_6 [1] : vector<8x128xf32> to vector<8xf32>
    %17 = vector.shape_cast %16 : vector<8xf32> to vector<8x1xf32>
    %cst_7 = arith.constant dense<0.000000e+00> : vector<8xf32>
    %18 = vector.multi_reduction <add>, %15, %cst_7 [1] : vector<8x128xf32> to vector<8xf32>
    %19 = vector.shape_cast %18 : vector<8xf32> to vector<8x1xf32>
    %20 = arith.subf %13, %7 : vector<8x128xf32>
    %21 = arith.mulf %15, %20 : vector<8x128xf32>
    %cst_8 = arith.constant dense<0.000000e+00> : vector<8xf32>
    %22 = vector.multi_reduction <add>, %21, %cst_8 [1] : vector<8x128xf32> to vector<8xf32>
    %23 = vector.shape_cast %22 : vector<8xf32> to vector<8x1xf32>
    %24 = tpu.reciprocal %19 : vector<8x1xf32> -> vector<8x1xf32>
    %25 = arith.mulf %23, %24 : vector<8x1xf32>
    %26 = math.log %17 : vector<8x1xf32>
    %27 = math.log %19 : vector<8x1xf32>
    %28 = arith.subf %26, %27 : vector<8x1xf32>
    %29 = arith.addf %25, %28 : vector<8x1xf32>
    %cst_9 = arith.constant dense<0.000000e+00> : vector<1xf32>
    %30 = vector.multi_reduction <add>, %29, %cst_9 [0] : vector<8x1xf32> to vector<1xf32>
    %31 = vector.shape_cast %30 : vector<1xf32> to vector<1x1xf32>
    %32 = vector.shape_cast %31 : vector<1x1xf32> to vector<1x1xf32>
    %33 = vector.broadcast %32 : vector<1x1xf32> to vector<8x128xf32>
    %c0_10 = arith.constant 0 : index
    %c0_11 = arith.constant 0 : index
    %c0_12 = arith.constant 0 : index
    %34 = vector.load %arg3[%c0_10, %c0_11, %c0_12] : memref<1x8x128xf32, #tpu.memory_space<vmem>>, vector<1x8x128xf32>
    %35 = vector.shape_cast %34 : vector<1x8x128xf32> to vector<8x128xf32>
    %36 = vector.shape_cast %33 : vector<8x128xf32> to vector<1x8x128xf32>
    tpu.vector_store %arg3[%c0_10, %c0_11, %c0_12], %36 {strides = array<i32>} : memref<1x8x128xf32, #tpu.memory_space<vmem>>, vector<1x8x128xf32>,
    return
  }
  func.func @transform_0(%arg0: i32) -> (i32, i32) {
    %c0_i32 = arith.constant 0 : i32
    %c0_i32_0 = arith.constant 0 : i32
    return %arg0, %c0_i32 : i32, i32
  }
  func.func @transform_1(%arg0: i32) -> (i32, i32) {
    %c0_i32 = arith.constant 0 : i32
    %c0_i32_0 = arith.constant 0 : i32
    return %arg0, %c0_i32 : i32, i32
  }
  func.func @transform_2(%arg0: i32) -> (i32, i32, i32) {
    %c0_i32 = arith.constant 0 : i32
    %c0_i32_0 = arith.constant 0 : i32
    %c0_i32_1 = arith.constant 0 : i32
    return %arg0, %c0_i32, %c0_i32_0 : i32, i32, i32
  }
}

</mosaic_0001>

<bundles_post_ra>
// kernel: tpu_custom_call.1
= control target key start
LH: loop header
LB: loop body
LE: loop exit
PB: predicated region body
PF: predicated region fallthrough
CT: control target
= control target key end

     0   :  { %7 = vsyncpa [#allocation3], 0  ;;  %s226_s0 = inlined_call_operand.hbm [shape: f32[8,128], index: 0, kind: input, shape index: {}]   ;;  %s227_s1 = inlined_call_operand.hbm [shape: f32[8,128], index: 1, kind: input, shape index: {}]   ;;  %s228_s2 = inlined_call_operand.hbm [shape: f32[1,8,128], index: 2, kind: output, shape index: {}]  }
   0x1   :  { %8 = vsyncpa [#allocation6], 0 }
   0x2   :  { %9 = vsyncpa [#allocation4], 0  ;;  %s15_s11 = sshll.u32 %s226_s0, 4  ;;  %s199_s12 = smov [#allocation2]   ;;  %s16_s11 = int_to_ptr.hbm [resolvable:$true] %s15_s11 }
   0x3   :  { %s17_s13 = sshll.u32 %s199_s12, 4  ;;  %s26_s16 = sshll.u32 %s227_s1, 4  ;;  %s18_s13 = int_to_ptr.vmem [resolvable:$true] %s17_s13  ;;  %s27_s16 = int_to_ptr.hbm [resolvable:$true] %s26_s16 }
   0x4   :  { %20 = dma.hbm_to_vmem [thread:$0]  %s16_s11, 128, %s18_s13, [#allocation3]  }
   0x5   :  { %s200_s17 = smov [#allocation5]  }
   0x6   :  { %s28_s18 = sshll.u32 %s200_s17, 4  ;;  %s29_s18 = int_to_ptr.vmem [resolvable:$true] %s28_s18 }
   0x7   :  { %31 = dma.hbm_to_vmem [thread:$0]  %s27_s16, 128, %s29_s18, [#allocation6]  }
   0x8   :  { %193 = dma.done.wait [#allocation3], 128  }
   0x9   :  { %194 = vsyncadd [#allocation3], 4294967168 }
   0xa   :  { %195 = dma.done.wait [#allocation6], 128  }
   0xb   :  { %196 = vsyncadd [#allocation6], 4294967168  ;;  %v41_v0 = vld [vmem:[#allocation5] sm:$0xff]  ;;  %v40_v1 = vld [vmem:[#allocation2] sm:$0xff]  ;;  %s201_s0 = smov [#allocation7]   ;;  %s97_s21 = sshll.u32 %s228_s2, 4  ;;  %s98_s21 = int_to_ptr.hbm [resolvable:$true] %s97_s21 }
   0xc   :  { %46 = vmax.xlane.f32.xlu0 %v41_v0  ;;  %s95_s1 = sshll.u32 %s201_s0, 4  ;;  %s96_s1 = int_to_ptr.vmem [resolvable:$true] %s95_s1 }
  0x14   :  { %42 = vmax.xlane.f32.xlu0 %v40_v1 }
  0x7f   :  { %v47_v2 = vpop.xlane.xlu0 %46 }
  0x80   :  { %v48_v3 = vsub.f32 %v41_v0, %v47_v2 }
  0x82   :  { %v49_v4 = vmul.f32 0.25, %v48_v3 }
  0x84   :  { %v52_v5 = vmul.f32 1.442695, %v49_v4 }
  0x86   :  { %111 = vpow2.f32 %v52_v5 }
  0x87   :  { %v43_v6 = vpop.xlane.xlu0 %42 }
  0x88   :  { %v44_v7 = vsub.f32 %v40_v1, %v43_v6 }
  0x8a   :  { %v45_v8 = vmul.f32 0.25, %v44_v7 }
  0x8c   :  { %v112_v9 = vpop.eup %111  ;;  %v50_v10 = vmul.f32 1.442695, %v45_v8  ;;  %v58_v11 = vsub.f32 %v49_v4, %v45_v8 }
  0x8d   :  { %56 = vadd.xlane.f32.xlu1 %v112_v9 }
  0x8e   :  { %113 = vpow2.f32 %v50_v10  ;;  %v59_v12 = vmul.f32 %v112_v9, %v58_v11 }
  0x90   :  { %60 = vadd.xlane.f32.xlu2 %v59_v12 }
  0x94   :  { %v114_v13 = vpop.eup %113 }
  0x95   :  { %54 = vadd.xlane.f32.xlu1 %v114_v13 }
 0x100   :  { %v57_v14 = vpop.xlane.xlu1 %56 }
 0x101   :  { %115 = vrcp.f32 %v57_v14  ;;  %v73_v19 = vand.u32 2147483648, %v57_v14  ;;  %v71_v21 = vand.u32 2147483647, %v57_v14  ;;  %vm67_vm1 = vweird.f32 %v57_v14 }
 0x102   :  { %117 = vlog2.f32 %v57_v14 }
 0x103   :  { %v74_v25 = vor.u32 1.1754944e-38, %v73_v19  ;;  %vm72_vm3 = vcmp.eq.f32.partialorder %v71_v21, 8.507059e+37  ;;  %v61_v30 = vpop.xlane.xlu2 %60 }
 0x107   :  { %v116_v15 = vpop.eup %115 }
 0x108   :  { %v63_v16 = vmul.f32 %v116_v15, %v57_v14  ;;  %v55_v17 = vpop.xlane.xlu1 %54  ;;  %vm68_vm0 = vweird.f32 %v116_v15  ;;  %v118_v22 = vpop.eup %117 }
 0x109   :  { %119 = vlog2.f32 %v55_v17  ;;  %vm69_vm2 = vmor %vm67_vm1, %vm68_vm0  ;;  %v80_v27 = vmul.f32 0.6931472, %v118_v22 }
 0x10a   :  { %v64_v18 = vsub.f32 1.0, %v63_v16 }
 0x10c   :  { %v65_v20 = vmul.f32 %v116_v15, %v64_v18 }
 0x10e   :  { %v66_v23 = vadd.f32 %v116_v15, %v65_v20 }
 0x10f   :  { %v120_v24 = vpop.eup %119 }
 0x110   :  { %v70_v26 = vsel %vm69_vm2, %v116_v15, %v66_v23  ;;  %v78_v28 = vmul.f32 0.6931472, %v120_v24 }
 0x111   :  { %v75_v29 = vsel %vm72_vm3, %v74_v25, %v70_v26 }
 0x112   :  { %v76_v31 = vmul.f32 %v75_v29, %v61_v30  ;;  %v81_v32 = vsub.f32 %v78_v28, %v80_v27 }
 0x114   :  { %v82_v33 = vadd.f32 %v81_v32, %v76_v31 }
 0x116   :  { %v83_v34 = vrot.slane %v82_v33, 4 }
 0x118   :  { %v84_v35 = vadd.f32 %v83_v34, %v82_v33 }
 0x11a   :  { %v85_v36 = vrot.slane %v84_v35, 2 }
 0x11c   :  { %v86_v37 = vadd.f32 %v85_v36, %v84_v35 }
 0x11e   :  { %v87_v38 = vrot.slane %v86_v37, 1 }
 0x120   :  { %v88_v39 = vadd.f32 %v87_v38, %v86_v37 }
 0x122   :  { %89 = vst [vmem:[#allocation7] sm:$0xff] %v88_v39 }
 0x123   :  { %100 = dma.vmem_to_hbm [thread:$0]  %s96_s1, 128, %s98_s21, [#allocation4]  }
 0x124   :  { %197 = dma.done.wait [#allocation4], 128  }
 0x125   :  { %198 = vsyncadd [#allocation4], 4294967168 }
 0x126   :  { %105 = vsyncpa [#allocation3], 1 }
 0x127   :  { %106 = vsyncpa [#allocation6], 1 }
 0x128   :  { %107 = vsyncpa [#allocation4], 1 }

</bundles_post_ra>
